<compile_context>
chip_gen: v7x
topology: tpu7x:2x2x1
jax: 0.10.0
libtpu: 0.0.40
codegen_flags: <defaults>
</compile_context>

<pallas_src>
import jax
import jax.numpy as jnp
import numpy as np
from jax.experimental import pallas as pl
from jax.experimental.pallas import tpu as pltpu


def _round_up(x, m):
    return ((x + m - 1) // m) * m


def encoder_rnn_forward(token_ids, emb_table, w_ih, w_hh, b_ih, b_hh,
                        *, time_chunk=None):
    """EncoderRNN.forward: returns last_hidden with shape [1, B, H].

    token_ids : int32 [B, T]
    emb_table : f32   [V, D]   (GloVe vectors stand-in)
    w_ih      : f32   [H, D]   (PyTorch weight_ih_l0 layout)
    w_hh      : f32   [H, H]   (PyTorch weight_hh_l0 layout)
    b_ih,b_hh : f32   [H]
    time_chunk: timesteps per grid step; None = auto (256, VMEM-capped).
    """
    B, T = token_ids.shape
    H, D = w_ih.shape
    f32 = jnp.float32

    if T == 0:  # degenerate: nn.RNN would error; return zero hidden state.
        return jnp.zeros((1, B, H), f32)

    # ---- batch tiling: two tiles -> "parallel" grid axis (both TCs on v7x) --
    if B >= 16:
        Bp = _round_up(B, 16)
        n_btiles = 2
    else:
        Bp = _round_up(B, 8)          # sublane multiple
        n_btiles = 1
    Bt = Bp // n_btiles
    Hp = _round_up(H, 128)            # lane-dense hidden width

    # ---- VMEM-budgeted time chunk -------------------------------------------
    VMEM_LIMIT = 32 * 1024 * 1024     # scoped limit safe on v5e/v6e/v7x
    TC_BUDGET = 24 * 1024 * 1024      # headroom for pipeline bookkeeping
    fixed_bytes = Hp * Hp * 4 + 3 * Bt * Hp * 4   # W_hh (1 buf) + h_scratch + out (2 bufs)
    per_step_bytes = 2 * Bt * Hp * 4              # double-buffered pre chunk, per timestep
    tc_cap = max(1, (TC_BUDGET - fixed_bytes) // per_step_bytes)
    desired = 256 if time_chunk is None else int(time_chunk)
    Tc = int(max(1, min(desired, T, tc_cap)))
    Tp = _round_up(T, Tc)
    n_chunks = Tp // Tc
    last_valid = T - (n_chunks - 1) * Tc          # static, in (0, Tc]

    # ---- hoisted, time-independent input projection (XLA, D=50 unpadded) ----
    x_tm = jnp.take(emb_table.astype(f32), token_ids.T, axis=0)        # [T, B, D]
    pre = jnp.einsum('tbd,hd->tbh', x_tm, w_ih.astype(f32)) \
        + (b_ih + b_hh).astype(f32)                                    # [T, B, H]
    pre_p = jnp.pad(pre, ((0, Tp - T), (0, Bp - B), (0, Hp - H)))      # [Tp, Bp, Hp]

    # zero padding of W_hh^T is exact for the recurrence (padded h cols stay 0)
    whh_t = jnp.pad(w_hh.T.astype(f32), ((0, Hp - H), (0, Hp - H)))    # [Hp, Hp]

    # ---- kernel: pure recurrence, one chunk of timesteps per grid step ------
    def rnn_chunk_kernel(pre_ref, whh_ref, h_out_ref, h_scratch):
        c = pl.program_id(1)
        n_c = pl.num_programs(1)

        @pl.when(c == 0)
        def _init():
            h_scratch[...] = jnp.zeros_like(h_scratch)

        whh = whh_ref[...]            # resident weight, single-buffered

        def chunk_body(n_steps):
            def body():
                def step(i, h):
                    # pre_ref[i] is h-independent; partial unroll lets the
                    # scheduler prefetch it into the dependent-matmul bubbles.
                    return jnp.tanh(
                        pre_ref[i]
                        + jnp.dot(h, whh, preferred_element_type=jnp.float32))
                h0 = h_scratch[...]   # hidden carried in vregs across the chunk
                unroll = True if n_steps <= 32 else 8
                h_scratch[...] = jax.lax.fori_loop(0, n_steps, step, h0,
                                                   unroll=unroll)
            return body

        if last_valid == Tc:
            # every chunk is full: single mask-free path
            chunk_body(Tc)()
        else:
            # full chunks are mask-free; only the last chunk runs fewer steps
            pl.when(c < n_c - 1)(chunk_body(Tc))
            pl.when(c == n_c - 1)(chunk_body(last_valid))

        @pl.when(c == n_c - 1)
        def _finalize():
            h_out_ref[...] = h_scratch[...].astype(h_out_ref.dtype)

    h_pad = pl.pallas_call(
        rnn_chunk_kernel,
        out_shape=jax.ShapeDtypeStruct((Bp, Hp), f32),
        grid_spec=pltpu.PrefetchScalarGridSpec(
            num_scalar_prefetch=0,
            grid=(n_btiles, n_chunks),
            in_specs=[
                # pre-activation chunk: [Tc, Bt, Hp], streamed over time
                pl.BlockSpec((Tc, Bt, Hp), lambda b, c: (c, b, 0)),
                # W_hh^T: constant block index -> single buffer
                pl.BlockSpec((Hp, Hp), lambda b, c: (0, 0),
                             pipeline_mode=pl.Buffered(buffer_count=1)),
            ],
            out_specs=pl.BlockSpec((Bt, Hp), lambda b, c: (b, 0)),
            scratch_shapes=[
                pltpu.VMEM((Bt, Hp), jnp.float32),   # hidden carry
            ],
        ),
        compiler_params=pltpu.CompilerParams(
            dimension_semantics=("parallel", "arbitrary"),  # batch || , time serial
            vmem_limit_bytes=VMEM_LIMIT,
        ),
    )(pre_p, whh_t)

    return h_pad[:B, :H][None, :, :]                 # [1, B, H]


def encoder_rnn_reference(token_ids, emb_table, w_ih, w_hh, b_ih, b_hh):
    """Pure-JAX reference (lax.scan) matching torch.nn.RNN(batch_first=True)."""
    x_emb = jnp.take(emb_table, token_ids, axis=0)          # [B, T, D]
    B = token_ids.shape[0]
    H = w_ih.shape[0]
    h0 = jnp.zeros((B, H), jnp.float32)

    def step(h, x_t):
        h_new = jnp.tanh(x_t @ w_ih.T + b_ih + h @ w_hh.T + b_hh)
        return h_new, None

    h_last, _ = jax.lax.scan(step, h0, jnp.transpose(x_emb, (1, 0, 2)))
    return h_last[None, :, :]


if __name__ == "__main__":
    # Small shapes consistent with the module (GloVe dim 50 kept; hidden shrunk
    # from 768 to a single 128-lane tile).
    key = jax.random.PRNGKey(0)
    k_emb, k_wih, k_whh, k_bih, k_bhh, k_tok1, k_tok2 = jax.random.split(key, 7)

    V, D, H = 100, 50, 128
    emb_table = jax.random.normal(k_emb, (V, D), jnp.float32) * 0.1
    w_ih = jax.random.normal(k_wih, (H, D), jnp.float32) * 0.1
    w_hh = jax.random.normal(k_whh, (H, H), jnp.float32) * 0.1
    b_ih = jax.random.normal(k_bih, (H,), jnp.float32) * 0.1
    b_hh = jax.random.normal(k_bhh, (H,), jnp.float32) * 0.1

    # TODO(synk): real module loads pretrained GloVe vectors from disk; a random
    # table stands in here since the script must not read files.

    # Case 1: small batch, multi-chunk time axis with a partial last chunk
    # (exercises the two-path pl.when and the hidden-carry across chunks).
    B1, T1 = 4, 10
    tok1 = jax.random.randint(k_tok1, (B1, T1), 0, V, jnp.int32)
    out1 = jax.block_until_ready(
        encoder_rnn_forward(tok1, emb_table, w_ih, w_hh, b_ih, b_hh, time_chunk=4))
    ref1 = jax.block_until_ready(
        encoder_rnn_reference(tok1, emb_table, w_ih, w_hh, b_ih, b_hh))
    assert out1.shape == (1, B1, H), out1.shape
    np.testing.assert_allclose(np.asarray(out1), np.asarray(ref1),
                               rtol=1e-5, atol=1e-5)

    # Case 2: batch >= 16 -> two batch tiles on the parallel grid axis (both
    # TensorCores on v7x), auto time_chunk (single full chunk here).
    B2, T2 = 20, 13
    tok2 = jax.random.randint(k_tok2, (B2, T2), 0, V, jnp.int32)
    out2 = jax.block_until_ready(
        encoder_rnn_forward(tok2, emb_table, w_ih, w_hh, b_ih, b_hh))
    ref2 = jax.block_until_ready(
        encoder_rnn_reference(tok2, emb_table, w_ih, w_hh, b_ih, b_hh))
    assert out2.shape == (1, B2, H), out2.shape
    np.testing.assert_allclose(np.asarray(out2), np.asarray(ref2),
                               rtol=1e-5, atol=1e-5)

    print("KERNEL_OK")
</pallas_src>

<mosaic_0001>
module attributes {stable_mosaic.version = 11 : i64} {
  func.func @rnn_chunk_kernel(%arg0: i32, %arg1: i32, %arg2: memref<4x8x128xf32, #tpu.memory_space<vmem>>, %arg3: memref<128x128xf32, #tpu.memory_space<vmem>>, %arg4: memref<8x128xf32, #tpu.memory_space<vmem>>, %arg5: memref<8x128xf32, #tpu.memory_space<vmem>>) attributes {dimension_semantics = [#tpu.dimension_semantics<parallel>, #tpu.dimension_semantics<arbitrary>], iteration_bounds = array<i64: 1, 3>, scalar_prefetch = 0 : i64, scratch_operands = 1 : i64, tpu.core_type = #tpu.core_type<tc>, window_params = [{transform_indices = @transform_0, window_bounds = array<i64: 4, 8, 128>}, {pipeline_mode = #tpu.pipeline_mode<synchronous>, transform_indices = @transform_1, window_bounds = array<i64: 128, 128>}, {transform_indices = @transform_2, window_bounds = array<i64: 8, 128>}]} {
    %c0_i32 = arith.constant 0 : i32
    %0 = arith.cmpi eq, %arg1, %c0_i32 : i32
    %1 = arith.extui %0 : i1 to i32
    %c0_i32_0 = arith.constant 0 : i32
    %2 = arith.cmpi ne, %1, %c0_i32_0 : i32
    scf.if %2 {
      %cst = arith.constant 0.000000e+00 : f32
      %13 = vector.broadcast %cst : f32 to vector<8x128xf32>
      %c0_7 = arith.constant 0 : index
      %c0_8 = arith.constant 0 : index
      %14 = vector.load %arg5[%c0_7, %c0_8] : memref<8x128xf32, #tpu.memory_space<vmem>>, vector<8x128xf32>
      tpu.vector_store %arg5[%c0_7, %c0_8], %13 {strides = array<i32>} : memref<8x128xf32, #tpu.memory_space<vmem>>, vector<8x128xf32>,
    } else {
    }
    %c0 = arith.constant 0 : index
    %c0_1 = arith.constant 0 : index
    %3 = vector.load %arg3[%c0, %c0_1] : memref<128x128xf32, #tpu.memory_space<vmem>>, vector<128x128xf32>
    %c2_i32 = arith.constant 2 : i32
    %4 = arith.cmpi slt, %arg1, %c2_i32 : i32
    %5 = arith.extui %4 : i1 to i32
    %c0_i32_2 = arith.constant 0 : i32
    %6 = arith.cmpi ne, %5, %c0_i32_2 : i32
    scf.if %6 {
      %c0_7 = arith.constant 0 : index
      %c0_8 = arith.constant 0 : index
      %13 = vector.load %arg5[%c0_7, %c0_8] : memref<8x128xf32, #tpu.memory_space<vmem>>, vector<8x128xf32>
      %c0_i32_9 = arith.constant 0 : i32
      %14 = arith.index_cast %c0_i32_9 : i32 to index
      %c0_10 = arith.constant 0 : index
      %c0_11 = arith.constant 0 : index
      %15 = vector.load %arg2[%14, %c0_10, %c0_11] : memref<4x8x128xf32, #tpu.memory_space<vmem>>, vector<1x8x128xf32>
      %16 = vector.shape_cast %15 : vector<1x8x128xf32> to vector<8x128xf32>
      %cst = arith.constant dense<0.000000e+00> : vector<8x128xf32>
      %17 = tpu.matmul %13, %3, %cst {dimension_numbers = #tpu.dot_dimension_numbers<[1], [0], [0], [1], [0, 0, 1, 1], [], []>} : vector<8x128xf32>, vector<128x128xf32>, vector<8x128xf32> -> vector<8x128xf32>
      %18 = arith.addf %16, %17 : vector<8x128xf32>
      %19 = math.tanh %18 : vector<8x128xf32>
      %c1_i32 = arith.constant 1 : i32
      %20 = arith.index_cast %c1_i32 : i32 to index
      %c0_12 = arith.constant 0 : index
      %c0_13 = arith.constant 0 : index
      %21 = vector.load %arg2[%20, %c0_12, %c0_13] : memref<4x8x128xf32, #tpu.memory_space<vmem>>, vector<1x8x128xf32>
      %22 = vector.shape_cast %21 : vector<1x8x128xf32> to vector<8x128xf32>
      %cst_14 = arith.constant dense<0.000000e+00> : vector<8x128xf32>
      %23 = tpu.matmul %19, %3, %cst_14 {dimension_numbers = #tpu.dot_dimension_numbers<[1], [0], [0], [1], [0, 0, 1, 1], [], []>} : vector<8x128xf32>, vector<128x128xf32>, vector<8x128xf32> -> vector<8x128xf32>
      %24 = arith.addf %22, %23 : vector<8x128xf32>
      %25 = math.tanh %24 : vector<8x128xf32>
      %c2_i32_15 = arith.constant 2 : i32
      %26 = arith.index_cast %c2_i32_15 : i32 to index
      %c0_16 = arith.constant 0 : index
      %c0_17 = arith.constant 0 : index
      %27 = vector.load %arg2[%26, %c0_16, %c0_17] : memref<4x8x128xf32, #tpu.memory_space<vmem>>, vector<1x8x128xf32>
      %28 = vector.shape_cast %27 : vector<1x8x128xf32> to vector<8x128xf32>
      %cst_18 = arith.constant dense<0.000000e+00> : vector<8x128xf32>
      %29 = tpu.matmul %25, %3, %cst_18 {dimension_numbers = #tpu.dot_dimension_numbers<[1], [0], [0], [1], [0, 0, 1, 1], [], []>} : vector<8x128xf32>, vector<128x128xf32>, vector<8x128xf32> -> vector<8x128xf32>
      %30 = arith.addf %28, %29 : vector<8x128xf32>
      %31 = math.tanh %30 : vector<8x128xf32>
      %c3_i32 = arith.constant 3 : i32
      %32 = arith.index_cast %c3_i32 : i32 to index
      %c0_19 = arith.constant 0 : index
      %c0_20 = arith.constant 0 : index
      %33 = vector.load %arg2[%32, %c0_19, %c0_20] : memref<4x8x128xf32, #tpu.memory_space<vmem>>, vector<1x8x128xf32>
      %34 = vector.shape_cast %33 : vector<1x8x128xf32> to vector<8x128xf32>
      %cst_21 = arith.constant dense<0.000000e+00> : vector<8x128xf32>
      %35 = tpu.matmul %31, %3, %cst_21 {dimension_numbers = #tpu.dot_dimension_numbers<[1], [0], [0], [1], [0, 0, 1, 1], [], []>} : vector<8x128xf32>, vector<128x128xf32>, vector<8x128xf32> -> vector<8x128xf32>
      %36 = arith.addf %34, %35 : vector<8x128xf32>
      %37 = math.tanh %36 : vector<8x128xf32>
      %c4_i32 = arith.constant 4 : i32
      %c0_22 = arith.constant 0 : index
      %c0_23 = arith.constant 0 : index
      %38 = vector.load %arg5[%c0_22, %c0_23] : memref<8x128xf32, #tpu.memory_space<vmem>>, vector<8x128xf32>
      tpu.vector_store %arg5[%c0_22, %c0_23], %37 {strides = array<i32>} : memref<8x128xf32, #tpu.memory_space<vmem>>, vector<8x128xf32>,
    } else {
    }
    %c2_i32_3 = arith.constant 2 : i32
    %7 = arith.cmpi eq, %arg1, %c2_i32_3 : i32
    %8 = arith.extui %7 : i1 to i32
    %c0_i32_4 = arith.constant 0 : i32
    %9 = arith.cmpi ne, %8, %c0_i32_4 : i32
    scf.if %9 {
      %c0_7 = arith.constant 0 : index
      %c0_8 = arith.constant 0 : index
      %13 = vector.load %arg5[%c0_7, %c0_8] : memref<8x128xf32, #tpu.memory_space<vmem>>, vector<8x128xf32>
      %c0_i32_9 = arith.constant 0 : i32
      %14 = arith.index_cast %c0_i32_9 : i32 to index
      %c0_10 = arith.constant 0 : index
      %c0_11 = arith.constant 0 : index
      %15 = vector.load %arg2[%14, %c0_10, %c0_11] : memref<4x8x128xf32, #tpu.memory_space<vmem>>, vector<1x8x128xf32>
      %16 = vector.shape_cast %15 : vector<1x8x128xf32> to vector<8x128xf32>
      %cst = arith.constant dense<0.000000e+00> : vector<8x128xf32>
      %17 = tpu.matmul %13, %3, %cst {dimension_numbers = #tpu.dot_dimension_numbers<[1], [0], [0], [1], [0, 0, 1, 1], [], []>} : vector<8x128xf32>, vector<128x128xf32>, vector<8x128xf32> -> vector<8x128xf32>
      %18 = arith.addf %16, %17 : vector<8x128xf32>
      %19 = math.tanh %18 : vector<8x128xf32>
      %c1_i32 = arith.constant 1 : i32
      %20 = arith.index_cast %c1_i32 : i32 to index
      %c0_12 = arith.constant 0 : index
      %c0_13 = arith.constant 0 : index
      %21 = vector.load %arg2[%20, %c0_12, %c0_13] : memref<4x8x128xf32, #tpu.memory_space<vmem>>, vector<1x8x128xf32>
      %22 = vector.shape_cast %21 : vector<1x8x128xf32> to vector<8x128xf32>
      %cst_14 = arith.constant dense<0.000000e+00> : vector<8x128xf32>
      %23 = tpu.matmul %19, %3, %cst_14 {dimension_numbers = #tpu.dot_dimension_numbers<[1], [0], [0], [1], [0, 0, 1, 1], [], []>} : vector<8x128xf32>, vector<128x128xf32>, vector<8x128xf32> -> vector<8x128xf32>
      %24 = arith.addf %22, %23 : vector<8x128xf32>
      %25 = math.tanh %24 : vector<8x128xf32>
      %c2_i32_15 = arith.constant 2 : i32
      %c0_16 = arith.constant 0 : index
      %c0_17 = arith.constant 0 : index
      %26 = vector.load %arg5[%c0_16, %c0_17] : memref<8x128xf32, #tpu.memory_space<vmem>>, vector<8x128xf32>
      tpu.vector_store %arg5[%c0_16, %c0_17], %25 {strides = array<i32>} : memref<8x128xf32, #tpu.memory_space<vmem>>, vector<8x128xf32>,
    } else {
    }
    %c2_i32_5 = arith.constant 2 : i32
    %10 = arith.cmpi eq, %arg1, %c2_i32_5 : i32
    %11 = arith.extui %10 : i1 to i32
    %c0_i32_6 = arith.constant 0 : i32
    %12 = arith.cmpi ne, %11, %c0_i32_6 : i32
    scf.if %12 {
      %c0_7 = arith.constant 0 : index
      %c0_8 = arith.constant 0 : index
      %13 = vector.load %arg5[%c0_7, %c0_8] : memref<8x128xf32, #tpu.memory_space<vmem>>, vector<8x128xf32>
      %c0_9 = arith.constant 0 : index
      %c0_10 = arith.constant 0 : index
      %14 = vector.load %arg4[%c0_9, %c0_10] : memref<8x128xf32, #tpu.memory_space<vmem>>, vector<8x128xf32>
      tpu.vector_store %arg4[%c0_9, %c0_10], %13 {strides = array<i32>} : memref<8x128xf32, #tpu.memory_space<vmem>>, vector<8x128xf32>,
    } else {
    }
    return
  }
  func.func @transform_0(%arg0: i32, %arg1: i32) -> (i32, i32, i32) {
    %c0_i32 = arith.constant 0 : i32
    %c0_i32_0 = arith.constant 0 : i32
    return %arg1, %arg0, %c0_i32 : i32, i32, i32
  }
  func.func @transform_1(%arg0: i32, %arg1: i32) -> (i32, i32) {
    %c0_i32 = arith.constant 0 : i32
    %c0_i32_0 = arith.constant 0 : i32
    %c0_i32_1 = arith.constant 0 : i32
    return %c0_i32, %c0_i32_0 : i32, i32
  }
  func.func @transform_2(%arg0: i32, %arg1: i32) -> (i32, i32) {
    %c0_i32 = arith.constant 0 : i32
    %c0_i32_0 = arith.constant 0 : i32
    return %arg0, %c0_i32 : i32, i32
  }
}

</mosaic_0001>

<bundles_post_ra>
// kernel: tpu_custom_call.1
= control target key start
LH: loop header
LB: loop body
LE: loop exit
PB: predicated region body
PF: predicated region fallthrough
CT: control target
= control target key end

     0   :  { %7 = vsyncpa [#allocation4], 0  ;;  %s1804_s0 = inlined_call_operand.hbm [shape: f32[12,8,128], index: 0, kind: input, shape index: {}]   ;;  %s1805_s1 = inlined_call_operand.hbm [shape: f32[128,128], index: 1, kind: input, shape index: {}]   ;;  %s1806_s2 = inlined_call_operand.hbm [shape: f32[8,128], index: 2, kind: output, shape index: {}]  }
   0x1   :  { %9 = vsyncpa [#allocation4 + $0x1], 0 }
   0x2   :  { %10 = vsyncpa [#allocation7], 0 }
   0x3   :  { %11 = vsyncpa [#allocation5], 0  ;;  %s1488_s9 = smov 0   ;;  %s1490_s10 = smov 0  }
   0x4   :  { %s1492_s11 = smov 0   ;;  %s1494_s12 = smov 0  }
   0x5   :  { %s1496_s13 = smov 0   ;;  %s1498_s14 = smov 0  }
   0x6 LB: > { %s745_s15 = sadd.s32 4294967295, %s1459_s14   ;;  %p51_p0 = scmp.ne.s32.totalorder %s1443_s10, %s1439_s9  ;;  %s1459_s14 = sphi %s1498_s14, %s17_s14   ;;  %s1455_s13 = sphi %s1496_s13, %s1824_s13   ;;  %s1451_s12 = sphi %s1494_s12, %s1823_s12   ;;  %s1447_s11 = sphi %s1492_s11, %s1822_s11   ;;  %s1443_s10 = sphi %s1490_s10, %s1821_s10   ;;  %s1439_s9 = sphi %s1488_s9, %s1820_s9  }
   0x7   : > { %p1520_p1 = scmp.eq.s32.totalorder %s745_s15, 0  ;;  %p746_p2 = scmp.ge.s32.totalorder %s1459_s14, 1 }
   0x8   : > { %p109_p3 = scmp.lt.s32.totalorder %s1459_s14, 4  ;;  %s1461_s19 = smov [#allocation6]  }
   0x9   : > { %s1811_s16 = scalar_select %p1520_p1, 1, 0 }
   0xa   : > { %p1528_p4 = por %p1520_p1, %p51_p0  ;;  %p1532_p5 = pnand %p746_p2, %p109_p3 }
   0xb   : > { %s121_s20 = sshll.u32 %s1461_s19, 4  ;;  %s26_s22 = sadd.s32 1, %s1455_s13  ;;  %s122_s20 = int_to_ptr.vmem [resolvable:$true] %s121_s20 }
   0xc   : > { %s1812_s17 = scalar_select %p1528_p4, 1, 0 }
   0xd   : > { %s1813_s18 = scalar_select %p1532_p5, 1, 0 }
   0xe   : > { %p1233_p6 = pneg %p1532_p5  ;;  %s1317_s25 = scalar_lea.hbm %s1805_s1, 2048 }
   0xf   : > { %p1318_p8 = scmp.ne.s32.totalorder %s1805_s1, %s1317_s25  ;;  %p1324_p12 = scmp.lt.u32.totalorder %s1317_s25, %s1805_s1 }
  0x10   : > { %p1540_p7 = pnand %p1233_p6, %p1520_p1 }
  0x12   : > { %p1319_p9 = pneg %p1540_p7 }
  0x14   : > { %p1320_p10 = pnand %p1319_p9, %p1318_p8 }
  0x16   : > { %p1321_p11 = pneg %p1320_p10 }
  0x18   : > { %p1326_p13 = pnand %p1324_p12, %p1321_p11 }
  0x1a   : > { %1329 = shalt.err (!%p1326_p13)
}
  0x1b   : > { %s1330_s30 = scalar_lea.vmem %s122_s20, 2048  ;;  %p1338_p6 = scmp.lt.s32.totalorder %s122_s20, %s122_s20 }
  0x1c   : > { %p1331_p0 = scmp.ne.s32.totalorder %s122_s20, %s1330_s30  ;;  %p1339_p1 = scmp.lt.s32.totalorder %s1330_s30, %s1330_s30 }
  0x1e   : > { %p1333_p2 = pnand %p1331_p0, %p1319_p9  ;;  %p1340_p4 = por %p1339_p1, %p1338_p6 }
  0x20   : > { %p1334_p3 = pneg %p1333_p2 }
  0x22   : > { %p1341_p5 = pnand %p1340_p4, %p1334_p3 }
  0x24   : > { %1344 = shalt.err (!%p1341_p5)
}
  0x25   : > { %s1462_s3 = smov 128   ;;  %s1463_s4 = smov 8  }
  0x26   : > { %1236 = dma.hbm_to_vmem [thread:$0]  (!%p1540_p7), %s1805_s1, 2048, %s122_s20, [#allocation7], %s1462_s3, %s1462_s3, %s1463_s4  }
  0x27   : > { %p27_p1 = scmp.ge.s32.totalorder %s26_s22, 3  ;;  %s38_s7 = sadd.s32 1, %s1447_s11 }
  0x28   : > { %p45_p4 = scmp.ne.s32.totalorder %s1447_s11, %s1443_s10  ;;  %p46_p5 = scmp.eq.s32.totalorder %s1459_s14, 0 }
  0x29   : > { %s1826_s22 = smov (%p27_p1, %s26_s22), 0  ;;  %p1242_p9 = scmp.lt.s32.totalorder %s1459_s14, 3 }
  0x2a   : > { %p47_p8 = por %p46_p5, %p45_p4  ;;  %s33_s8 = ssub.s32 %s1455_s13, %s1826_s22 }
  0x2b   : > { %s135_s9 = sand.u32 1, %s1447_s11   ;;  %p36_p10 = scmp.eq.s32.totalorder %s33_s8, 0 }
  0x2c   : > { %s749_s19 = sshll.u32 %s135_s9, 5  ;;  %s766_s21 = sshll.u32 %s1455_s13, 9 }
  0x2d   : > { %s1576_s23 = scalar_select %p36_p10, %s1447_s11, %s38_s7  }
  0x2e   : > { %s1581_s20 = scalar_lea.hbm %s1804_s0, %s766_s21  ;;  %s139_s26 = scalar_lea.vmem [#allocation3], %s749_s19 }
  0x2f   : > { %s147_s27 = sshll.u32 %s139_s26, 4  ;;  %p1583_p7 = pnand %p1242_p9, %p47_p8  ;;  %s1587_s27 = int_to_ptr.vmem [resolvable:$true] %s147_s27 }
  0x30   : > { %s1589_s29 = scalar_lea.sflag [#allocation4], %s135_s9  ;;  %s1345_s30 = scalar_lea.hbm %s1581_s20, 512 }
  0x31   : > { %p1346_p11 = scmp.ne.s32.totalorder %s1581_s20, %s1345_s30  ;;  %p1347_p12 = pneg %p1583_p7 }
  0x32   : > { %s1350_s7 = scalar_lea.hbm %s1804_s0, 1536  ;;  %p1351_p2 = scmp.lt.u32.totalorder %s1581_s20, %s1804_s0 }
  0x33   : > { %p1348_p13 = pnand %p1347_p12, %p1346_p11  ;;  %p1352_p3 = scmp.lt.u32.totalorder %s1350_s7, %s1345_s30 }
  0x34   : > { %p1354_p1 = scmp.lt.u32.totalorder %s1345_s30, %s1581_s20 }
  0x35   : > { %p1349_p0 = pneg %p1348_p13  ;;  %p1353_p6 = por %p1352_p3, %p1351_p2 }
  0x37   : > { %p1355_p4 = por %p1354_p1, %p1353_p6 }
  0x39   : > { %p1356_p5 = pnand %p1355_p4, %p1349_p0 }
  0x3b   : > { %1359 = shalt.err (!%p1356_p5)
}
  0x3c   : > { %s1360_s9 = scalar_lea.vmem %s1587_s27, 512  ;;  %s1464_s21 = smov [#allocation3]  }
  0x3d   : > { %p1361_p8 = scmp.ne.s32.totalorder %s1587_s27, %s1360_s9  ;;  %s1365_s24 = sshll.u32 %s1464_s21, 4  ;;  %s1366_s24 = int_to_ptr.vmem [resolvable:$false] %s1365_s24 }
  0x3e   : > { %s1367_s25 = scalar_lea.vmem %s1366_s24, 1024  ;;  %p1368_p11 = scmp.lt.s32.totalorder %s1587_s27, %s1366_s24 }
  0x3f   : > { %p1363_p9 = pnand %p1361_p8, %p1347_p12  ;;  %p1369_p13 = scmp.lt.s32.totalorder %s1367_s25, %s1360_s9 }
  0x41   : > { %p1364_p10 = pneg %p1363_p9  ;;  %p1370_p2 = por %p1369_p13, %p1368_p11 }
  0x43   : > { %p1371_p3 = pnand %p1370_p2, %p1364_p10 }
  0x45   : > { %1374 = shalt.err (!%p1371_p3)
}
  0x46   : > { %1240 = dma.hbm_to_vmem [thread:$0]  (!%p1583_p7), %s1581_s20, 512, %s1587_s27, %s1589_s29, %s1462_s3, %s1462_s3, %s1463_s4  }
  0x47   : > { %p1816_p12 = scmp.ne.s32.totalorder %s1813_s18, 0 }
  0x48   : > { %s161_s26 = sand.u32 (!%p1816_p12), 1, %s1443_s10   ;;  %p1817_p0 = scmp.ne.s32.totalorder (!%p1816_p12), %s1812_s17, 0 }
  0x49   : > { %159 = sbr.rel (%p1816_p12) target bundleno = 1538 (0x602), region = 28  ;;  %s753_s30 = sshll.u32 (!%p1816_p12), %s161_s26, 5 }
  0x4a   : > { %s162_s5 = scalar_lea.sflag (!%p1816_p12), [#allocation4], %s161_s26  ;;  %s1623_s6 = scalar_lea.vmem (!%p1816_p12), [#allocation3], %s753_s30 }
  0x50   : > { %1426 = dma.done.wait (%p1817_p0), %s162_s5, 512  }
  0x51   : > { %1428 = vsyncadd (%p1817_p0), %s162_s5, 4294966784  ;;  %p1818_p6 = scmp.ne.s32.totalorder %s1811_s16, 0 }
  0x53   : > { %1430 = dma.done.wait (%p1818_p6), [#allocation7], 2048  }
  0x54   : > { %1432 = vsyncadd (%p1818_p6), [#allocation7], 4294965248  ;;  %p755_p7 = scmp.ne.s32.totalorder %s1451_s12, 0 }
  0x55   : > { %v1465_v0 = vmov (!%p755_p7), 0.0  }
  0x56   : > { %189 = sbr.rel (%p755_p7) target bundleno = 93 (0x5d), region = 40  ;;  %190 = vst [vmem:[#allocation2] sm:$0xff] (!%p755_p7), %v1465_v0 }
  0x5d PF: > { %v1634_v1 = vld [vmem:[#allocation6] sm:$0xff]  ;;  %v1636_v2 = vld [vmem:[#allocation6 + $0x8] sm:$0xff]  ;;  %v1638_v3 = vld [vmem:[#allocation6 + $0x10] sm:$0xff]  ;;  %p756_p1 = scmp.ge.s32.totalorder %s1451_s12, 2 }
  0x5e   : > { %v1640_v4 = vld [vmem:[#allocation6 + $0x18] sm:$0xff]  ;;  %v1642_v5 = vld [vmem:[#allocation6 + $0x20] sm:$0xff]  ;;  %v1644_v6 = vld [vmem:[#allocation6 + $0x28] sm:$0xff]  ;;  %v1669_v17 = vpack.c.bf16 (!%p756_p1), %v1636_v2, %v1634_v1  ;;  %v1466_v18 = vmov (!%p756_p1), 0.0|0.0   ;;  %vm1467_vm0 = vmmov (!%p756_p1), 0   ;;  %v1468_v20 = vmov (!%p756_p1), 0.0  }
  0x5f   : > { %v1646_v7 = vld [vmem:[#allocation6 + $0x30] sm:$0xff]  ;;  %v1648_v8 = vld [vmem:[#allocation6 + $0x38] sm:$0xff]  ;;  %v1650_v9 = vld [vmem:[#allocation6 + $0x40] sm:$0xff]  ;;  %210 = sbr.rel (%p756_p1) target bundleno = 1028 (0x404), region = 44  ;;  %1079 = vmatprep.subr.bf16.mxu0 (!%p756_p1), %v1466_v18  ;;  %v1675_v19 = vpack.c.bf16 (!%p756_p1), %v1640_v4, %v1638_v3  ;;  %1103 = vmatprep.subr.bf16.mxu1 (!%p756_p1), %v1466_v18  ;;  %v1086_v21 = vpack.c.bf16 (!%p756_p1), %v1644_v6, %v1642_v5 }
  0x60   : > { %v1652_v10 = vld [vmem:[#allocation6 + $0x48] sm:$0xff]  ;;  %v1654_v11 = vld [vmem:[#allocation6 + $0x50] sm:$0xff]  ;;  %v1656_v12 = vld [vmem:[#allocation6 + $0x58] sm:$0xff]  ;;  %1081 = vmatpush3.bf16.msra.mxu0 (!%p756_p1), %v1669_v17  ;;  %901 = vmatprep.mubr.msk.f32.mxu0 (!%p756_p1), %vm1467_vm0, %v1468_v20  ;;  %v1089_v22 = vpack.c.bf16 (!%p756_p1), %v1648_v8, %v1646_v7 }
  0x61   : > { %v1658_v13 = vld [vmem:[#allocation6 + $0x60] sm:$0xff]  ;;  %v1660_v14 = vld [vmem:[#allocation6 + $0x68] sm:$0xff]  ;;  %v1662_v15 = vld [vmem:[#allocation6 + $0x70] sm:$0xff]  ;;  %1082 = vmatprep.subr.bf16.mxu0 (!%p756_p1), %v1466_v18  ;;  %1105 = vmatpush3.bf16.msra.mxu1 (!%p756_p1), %v1669_v17  ;;  %v1092_v23 = vpack.c.bf16 (!%p756_p1), %v1652_v10, %v1650_v9  ;;  %v1095_v24 = vpack.c.bf16 (!%p756_p1), %v1656_v12, %v1654_v11 }
  0x62   : > { %v1664_v16 = vld [vmem:[#allocation6 + $0x78] sm:$0xff]  ;;  %936 = vmatprep.mubr.msk.f32.mxu1 (!%p756_p1), %vm1467_vm0, %v1468_v20  ;;  %1106 = vmatprep.subr.bf16.mxu1 (!%p756_p1), %v1466_v18  ;;  %v1098_v25 = vpack.c.bf16 (!%p756_p1), %v1660_v14, %v1658_v13  ;;  %v212_v28 = vld [vmem:[%s1623_s6] sm:$0xff] (!%p756_p1)  ;;  %v757_v33 = vld [vmem:[%s1623_s6 + $0x8] sm:$0xff] (!%p756_p1) }
  0x63   : > { %v1101_v26 = vpack.c.bf16 (!%p756_p1), %v1664_v16, %v1662_v15  ;;  %v211_v27 = vld [vmem:[#allocation2] sm:$0xff] (!%p756_p1)  ;;  %v758_v38 = vld [vmem:[%s1623_s6 + $0x10] sm:$0xff] (!%p756_p1) }
  0x64   : > { %1084 = vmatpush3.bf16.msra.mxu0 (!%p756_p1), %v1675_v19  ;;  %v759_v43 = vld [vmem:[%s1623_s6 + $0x18] sm:$0xff] (!%p756_p1) }
  0x65   : > { %1085 = vmatprep.subr.bf16.mxu0 (!%p756_p1), %v1466_v18  ;;  %1108 = vmatpush3.bf16.msra.mxu1 (!%p756_p1), %v1675_v19 }
  0x66   : > { %1109 = vmatprep.subr.bf16.mxu1 %v1466_v18 }
  0x68   : > { %1087 = vmatpush3.bf16.msra.mxu0 %v1086_v21 }
  0x69   : > { %1088 = vmatprep.subr.bf16.mxu0 %v1466_v18  ;;  %1111 = vmatpush3.bf16.msra.mxu1 %v1086_v21 }
  0x6a   : > { %1112 = vmatprep.subr.bf16.mxu1 %v1466_v18 }
  0x6c   : > { %1090 = vmatpush3.bf16.msra.mxu0 %v1089_v22 }
  0x6d   : > { %1091 = vmatprep.subr.bf16.mxu0 %v1466_v18  ;;  %1114 = vmatpush3.bf16.msra.mxu1 %v1089_v22 }
  0x6e   : > { %1115 = vmatprep.subr.bf16.mxu1 %v1466_v18 }
  0x70   : > { %1093 = vmatpush3.bf16.msra.mxu0 %v1092_v23 }
  0x71   : > { %1094 = vmatprep.subr.bf16.mxu0 %v1466_v18  ;;  %1117 = vmatpush3.bf16.msra.mxu1 %v1092_v23 }
  0x72   : > { %1118 = vmatprep.subr.bf16.mxu1 %v1466_v18 }
  0x74   : > { %1096 = vmatpush3.bf16.msra.mxu0 %v1095_v24 }
  0x75   : > { %1097 = vmatprep.subr.bf16.mxu0 %v1466_v18  ;;  %1120 = vmatpush3.bf16.msra.mxu1 %v1095_v24 }
  0x76   : > { %1121 = vmatprep.subr.bf16.mxu1 %v1466_v18 }
  0x78   : > { %1099 = vmatpush3.bf16.msra.mxu0 %v1098_v25 }
  0x79   : > { %1100 = vmatprep.subr.bf16.mxu0 %v1466_v18  ;;  %1123 = vmatpush3.bf16.msra.mxu1 %v1098_v25 }
  0x7a   : > { %1124 = vmatprep.subr.bf16.mxu1 %v1466_v18 }
  0x7c   : > { %1102 = vmatpush3.bf16.msra.mxu0 %v1101_v26 }
  0x7d   : > { %1127 = vmatprep.subr.bf16.mxu0 %v1466_v18  ;;  %1126 = vmatpush3.bf16.msra.mxu1 %v1101_v26 }
  0x7e   : > { %1151 = vmatprep.subr.bf16.mxu1 %v1466_v18 }
  0x7f   : > { %902 = vmatmul.mubr.f32.vlgmr.msra.gmra.mrb[0].mxu0 %v211_v27 }
  0x80   : > { %1129 = vmatpush3.bf16.msra.mxu0 %v1669_v17  ;;  %971 = vmatprep.mubr.msk.f32.mxu0 %vm1467_vm0, %v1468_v20 }
  0x81   : > { %1130 = vmatprep.subr.bf16.mxu0 %v1466_v18 }
  0x84   : > { %1132 = vmatpush3.bf16.msra.mxu0 %v1675_v19 }
  0x85   : > { %1133 = vmatprep.subr.bf16.mxu0 %v1466_v18 }
  0x88   : > { %1135 = vmatpush3.bf16.msra.mxu0 %v1086_v21 }
  0x89   : > { %1136 = vmatprep.subr.bf16.mxu0 %v1466_v18 }
  0x8c   : > { %1138 = vmatpush3.bf16.msra.mxu0 %v1089_v22 }
  0x8d   : > { %1139 = vmatprep.subr.bf16.mxu0 %v1466_v18 }
  0x90   : > { %1141 = vmatpush3.bf16.msra.mxu0 %v1092_v23 }
  0x91   : > { %1142 = vmatprep.subr.bf16.mxu0 %v1466_v18 }
  0x94   : > { %1144 = vmatpush3.bf16.msra.mxu0 %v1095_v24 }
  0x95   : > { %1145 = vmatprep.subr.bf16.mxu0 %v1466_v18 }
  0x98   : > { %1147 = vmatpush3.bf16.msra.mxu0 %v1098_v25 }
  0x99   : > { %1148 = vmatprep.subr.bf16.mxu0 %v1466_v18 }
  0x9c   : > { %1150 = vmatpush3.bf16.msra.mxu0 %v1101_v26 }
 0x152   : > { %v279_v29 = vpop.f32.mrb[0].mxu0 }
 0x153   : > { %v283_v30 = vadd.f32 %v279_v29, %v212_v28  ;;  %v903_v31 = vpop.f32.mrb[1].mxu0 }
 0x155   : > { %1305 = vtanh.f32 %v283_v30 }
 0x15f   : > { %v1306_v32 = vpop.eup %1305 }
 0x160   : > { %937 = vmatmul.mubr.f32.vlgmr.msra.gmra.mrb[0].mxu1 %v1306_v32 }
 0x161   : > { %1153 = vmatpush3.bf16.msra.mxu1 %v1669_v17  ;;  %1006 = vmatprep.mubr.msk.f32.mxu1 %vm1467_vm0, %v1468_v20 }
 0x162   : > { %1154 = vmatprep.subr.bf16.mxu1 %v1466_v18 }
 0x165   : > { %1156 = vmatpush3.bf16.msra.mxu1 %v1675_v19 }
 0x166   : > { %1157 = vmatprep.subr.bf16.mxu1 %v1466_v18 }
 0x169   : > { %1159 = vmatpush3.bf16.msra.mxu1 %v1086_v21 }
 0x16a   : > { %1160 = vmatprep.subr.bf16.mxu1 %v1466_v18 }
 0x16d   : > { %1162 = vmatpush3.bf16.msra.mxu1 %v1089_v22 }
 0x16e   : > { %1163 = vmatprep.subr.bf16.mxu1 %v1466_v18 }
 0x171   : > { %1165 = vmatpush3.bf16.msra.mxu1 %v1092_v23 }
 0x172   : > { %1166 = vmatprep.subr.bf16.mxu1 %v1466_v18 }
 0x175   : > { %1168 = vmatpush3.bf16.msra.mxu1 %v1095_v24 }
 0x176   : > { %1169 = vmatprep.subr.bf16.mxu1 %v1466_v18 }
 0x179   : > { %1171 = vmatpush3.bf16.msra.mxu1 %v1098_v25 }
 0x17a   : > { %1172 = vmatprep.subr.bf16.mxu1 %v1466_v18 }
 0x17d   : > { %1174 = vmatpush3.bf16.msra.mxu1 %v1101_v26 }
 0x233   : > { %v353_v34 = vpop.f32.mrb[0].mxu1 }
 0x234   : > { %v357_v35 = vadd.f32 %v757_v33, %v353_v34  ;;  %v938_v36 = vpop.f32.mrb[1].mxu1 }
 0x236   : > { %1307 = vtanh.f32 %v357_v35 }
 0x240   : > { %v1308_v37 = vpop.eup %1307 }
 0x241   : > { %972 = vmatmul.mubr.f32.vlgmr.msra.gmra.mrb[2].mxu0 %v1308_v37 }
 0x314   : > { %v427_v39 = vpop.f32.mrb[2].mxu0 }
 0x315   : > { %v431_v40 = vadd.f32 %v758_v38, %v427_v39  ;;  %v973_v41 = vpop.f32.mrb[3].mxu0 }
 0x317   : > { %1309 = vtanh.f32 %v431_v40 }
 0x321   : > { %v1310_v42 = vpop.eup %1309 }
 0x322   : > { %1007 = vmatmul.mubr.f32.vlgmr.msra.gmra.mrb[2].mxu1 %v1310_v42 }
 0x3f5   : > { %v501_v44 = vpop.f32.mrb[2].mxu1 }
 0x3f6   : > { %v505_v45 = vadd.f32 %v759_v43, %v501_v44  ;;  %v1008_v46 = vpop.f32.mrb[3].mxu1 }
 0x3f8   : > { %1311 = vtanh.f32 %v505_v45 }
 0x402   : > { %v1312_v47 = vpop.eup %1311 }
 0x403   : > { %507 = vst [vmem:[#allocation2] sm:$0xff] %v1312_v47 }
 0x404 PF: > { %p760_p4 = scmp.ne.s32.totalorder %s1451_s12, 2 }
 0x405   : > { %v1176_v48 = vpack.c.bf16 (!%p760_p4), %v1636_v2, %v1634_v1  ;;  %v1469_v49 = vmov (!%p760_p4), 0.0|0.0   ;;  %v1179_v50 = vpack.c.bf16 (!%p760_p4), %v1640_v4, %v1638_v3  ;;  %vm1470_vm1 = vmmov (!%p760_p4), 0   ;;  %v513_v59 = vld [vmem:[%s1623_s6] sm:$0xff] (!%p760_p4)  ;;  %v761_v0 = vld [vmem:[%s1623_s6 + $0x8] sm:$0xff] (!%p760_p4) }
 0x406   : > { %511 = sbr.rel (%p760_p4) target bundleno = 1513 (0x5e9), region = 48  ;;  %1175 = vmatprep.subr.bf16.mxu0 (!%p760_p4), %v1469_v49  ;;  %1199 = vmatprep.subr.bf16.mxu1 (!%p760_p4), %v1469_v49  ;;  %v1471_v51 = vmov (!%p760_p4), 0.0   ;;  %v1182_v52 = vpack.c.bf16 (!%p760_p4), %v1644_v6, %v1642_v5  ;;  %v1185_v53 = vpack.c.bf16 (!%p760_p4), %v1648_v8, %v1646_v7  ;;  %v1188_v54 = vpack.c.bf16 (!%p760_p4), %v1652_v10, %v1650_v9 }
 0x407   : > { %1177 = vmatpush3.bf16.msra.mxu0 (!%p760_p4), %v1176_v48  ;;  %1041 = vmatprep.mubr.msk.f32.mxu0 (!%p760_p4), %vm1470_vm1, %v1471_v51  ;;  %v1191_v55 = vpack.c.bf16 (!%p760_p4), %v1656_v12, %v1654_v11  ;;  %v1194_v56 = vpack.c.bf16 (!%p760_p4), %v1660_v14, %v1658_v13  ;;  %v1197_v57 = vpack.c.bf16 (!%p760_p4), %v1664_v16, %v1662_v15 }
 0x408   : > { %1178 = vmatprep.subr.bf16.mxu0 (!%p760_p4), %v1469_v49  ;;  %1201 = vmatpush3.bf16.msra.mxu1 (!%p760_p4), %v1176_v48 }
 0x409   : > { %1076 = vmatprep.mubr.msk.f32.mxu1 (!%p760_p4), %vm1470_vm1, %v1471_v51  ;;  %1202 = vmatprep.subr.bf16.mxu1 (!%p760_p4), %v1469_v49 }
 0x40a   : > { %v512_v58 = vld [vmem:[#allocation2] sm:$0xff] (!%p760_p4) }
 0x40b   : > { %1180 = vmatpush3.bf16.msra.mxu0 (!%p760_p4), %v1179_v50 }
 0x40c   : > { %1181 = vmatprep.subr.bf16.mxu0 (!%p760_p4), %v1469_v49  ;;  %1204 = vmatpush3.bf16.msra.mxu1 (!%p760_p4), %v1179_v50 }
 0x40d   : > { %1205 = vmatprep.subr.bf16.mxu1 %v1469_v49 }
 0x40f   : > { %1183 = vmatpush3.bf16.msra.mxu0 %v1182_v52 }
 0x410   : > { %1184 = vmatprep.subr.bf16.mxu0 %v1469_v49  ;;  %1207 = vmatpush3.bf16.msra.mxu1 %v1182_v52 }
 0x411   : > { %1208 = vmatprep.subr.bf16.mxu1 %v1469_v49 }
 0x413   : > { %1186 = vmatpush3.bf16.msra.mxu0 %v1185_v53 }
 0x414   : > { %1187 = vmatprep.subr.bf16.mxu0 %v1469_v49  ;;  %1210 = vmatpush3.bf16.msra.mxu1 %v1185_v53 }
 0x415   : > { %1211 = vmatprep.subr.bf16.mxu1 %v1469_v49 }
 0x417   : > { %1189 = vmatpush3.bf16.msra.mxu0 %v1188_v54 }
 0x418   : > { %1190 = vmatprep.subr.bf16.mxu0 %v1469_v49  ;;  %1213 = vmatpush3.bf16.msra.mxu1 %v1188_v54 }
 0x419   : > { %1214 = vmatprep.subr.bf16.mxu1 %v1469_v49 }
 0x41b   : > { %1192 = vmatpush3.bf16.msra.mxu0 %v1191_v55 }
 0x41c   : > { %1193 = vmatprep.subr.bf16.mxu0 %v1469_v49  ;;  %1216 = vmatpush3.bf16.msra.mxu1 %v1191_v55 }
 0x41d   : > { %1217 = vmatprep.subr.bf16.mxu1 %v1469_v49 }
 0x41f   : > { %1195 = vmatpush3.bf16.msra.mxu0 %v1194_v56 }
 0x420   : > { %1196 = vmatprep.subr.bf16.mxu0 %v1469_v49  ;;  %1219 = vmatpush3.bf16.msra.mxu1 %v1194_v56 }
 0x421   : > { %1220 = vmatprep.subr.bf16.mxu1 %v1469_v49 }
 0x423   : > { %1198 = vmatpush3.bf16.msra.mxu0 %v1197_v57 }
 0x424   : > { %1222 = vmatpush3.bf16.msra.mxu1 %v1197_v57 }
 0x426   : > { %1042 = vmatmul.mubr.f32.vlgmr.msra.gmra.mrb[0].mxu0 %v512_v58 }
 0x4f9   : > { %v580_v60 = vpop.f32.mrb[0].mxu0 }
 0x4fa   : > { %v584_v61 = vadd.f32 %v580_v60, %v513_v59  ;;  %v1043_v62 = vpop.f32.mrb[1].mxu0 }
 0x4fc   : > { %1313 = vtanh.f32 %v584_v61 }
 0x506   : > { %v1314_v63 = vpop.eup %1313 }
 0x507   : > { %1077 = vmatmul.mubr.f32.vlgmr.msra.gmra.mrb[0].mxu1 %v1314_v63 }
 0x5da   : > { %v654_v1 = vpop.f32.mrb[0].mxu1 }
 0x5db   : > { %v658_v2 = vadd.f32 %v761_v0, %v654_v1  ;;  %v1078_v3 = vpop.f32.mrb[1].mxu1 }
 0x5dd   : > { %1315 = vtanh.f32 %v658_v2 }
 0x5e7   : > { %v1316_v4 = vpop.eup %1315 }
 0x5e8   : > { %660 = vst [vmem:[#allocation2] sm:$0xff] %v1316_v4  ;;  %662 = vst [vmem:[#allocation8] sm:$0xff] %v1316_v4 }
 0x5e9 PF: > { %p1760_p5 = scmp.eq.s32.totalorder %s745_s15, 2  ;;  %s1472_s16 = smov [#allocation8]  }
 0x5ea   : > { %s672_s17 = sshll.u32 %s1472_s16, 4  ;;  %s673_s17 = int_to_ptr.vmem [resolvable:$true] %s672_s17 }
 0x5eb   : > { %s1375_s18 = scalar_lea.vmem %s673_s17, 128  ;;  %p1382_p11 = scmp.lt.s32.totalorder %s673_s17, %s673_s17 }
 0x5ec   : > { %p1376_p8 = scmp.ne.s32.totalorder %s673_s17, %s1375_s18  ;;  %p1383_p13 = scmp.lt.s32.totalorder %s1375_s18, %s1375_s18 }
 0x5ee   : > { %p1377_p9 = pnand %p1376_p8, %p1760_p5  ;;  %p1384_p2 = por %p1383_p13, %p1382_p11 }
 0x5f0   : > { %p1378_p10 = pneg %p1377_p9 }
 0x5f2   : > { %p1385_p3 = pnand %p1384_p2, %p1378_p10 }
 0x5f4   : > { %1388 = shalt.err (!%p1385_p3)
}
 0x5f5   : > { %s1389_s15 = scalar_lea.hbm %s1806_s2, 128 }
 0x5f6   : > { %p1390_p12 = scmp.ne.s32.totalorder %s1806_s2, %s1389_s15  ;;  %p1395_p7 = scmp.lt.u32.totalorder %s1389_s15, %s1806_s2 }
 0x5f8   : > { %p1391_p0 = pnand %p1390_p12, %p1760_p5 }
 0x5fa   : > { %p1392_p6 = pneg %p1391_p0 }
 0x5fc   : > { %p1397_p1 = pnand %p1395_p7, %p1392_p6 }
 0x5fe   : > { %1400 = shalt.err (!%p1397_p1)
}
 0x5ff   : > { %1230 = dma.vmem_to_hbm [thread:$0]  (%p1760_p5), %s673_s17, 128, %s1806_s2, [#allocation5]  }
 0x600   : > { %1434 = dma.done.wait (%p1760_p5), [#allocation5], 128  }
 0x601   : > { %1436 = vsyncadd (%p1760_p5), [#allocation5], 4294967168 }
 0x602 PF: > { %s17_s14 = sadd.s32 1, %s1459_s14   ;;  %s1820_s9 = smov %s1443_s10 }
 0x603   : > { %p14_p4 = scmp.ge.s32.totalorder %s17_s14, 5   ;;  %s1821_s10 = smov %s1447_s11 }
 0x604   : > { %s1822_s11 = smov %s1576_s23  ;;  %s1823_s12 = smov %s1455_s13 }
 0x605   : > { %s1824_s13 = smov %s1826_s22  ;;  %16 = sbr.rel (!%p14_p4) target bundleno = 6 (0x6), region = 86 }
 0x60c   :  { %685 = vsyncpa [#allocation4], 1 }
 0x60d   :  { %687 = vsyncpa [#allocation4 + $0x1], 1 }
 0x60e   :  { %688 = vsyncpa [#allocation7], 1 }
 0x60f   :  { %689 = vsyncpa [#allocation5], 1 }
 0x610   :  { %691 = vsyncpa [#allocation5 + $0x1], 1 }

</bundles_post_ra>
